<compile_context>
chip_gen: v7x
topology: tpu7x:2x2x1
jax: 0.10.0
libtpu: 0.0.40
codegen_flags: <defaults>
</compile_context>

<pallas_src>
import functools

import jax
import jax.numpy as jnp
import numpy as np
from jax.experimental import pallas as pl
from jax.experimental.pallas import tpu as pltpu


# ------------------------------- helpers ------------------------------------

def _pick_tile(dim, candidates):
    """Largest candidate tile that evenly divides `dim`; falls back to the full dim."""
    for c in candidates:
        if c <= dim and dim % c == 0:
            return c
    return dim


def _largest_divisor_leq(n, cap):
    for d in range(min(n, cap), 0, -1):
        if n % d == 0:
            return d
    return 1


def _bf16_round(x):
    return x.astype(jnp.bfloat16).astype(jnp.float32)


def _reorder_gate_rows(w, H):
    """PyTorch LSTM gate block order (i, f, g, o) -> kernel order (i, f, o, g).

    Works on [4H, ...] weight matrices and [4H] bias vectors alike.  A pure
    permutation of rows, so the math is unchanged; it just lets the kernel apply
    sigmoid to one contiguous 3H-wide slab and tanh to the trailing H-wide slab.
    """
    return jnp.concatenate([w[:2 * H], w[3 * H:4 * H], w[2 * H:3 * H]], axis=0)


# -------------------- fused input projection (tiled matmul) ------------------

def _matmul_bias_kernel(x_ref, w_ref, b_ref, o_ref, acc_ref):
    k = pl.program_id(2)

    @pl.when(k == 0)
    def _():
        acc_ref[...] = jnp.zeros_like(acc_ref)

    acc_ref[...] += jnp.dot(x_ref[...], w_ref[...],
                            preferred_element_type=jnp.float32)

    @pl.when(k == pl.num_programs(2) - 1)
    def _():
        o_ref[...] = (acc_ref[...] + b_ref[...]).astype(o_ref.dtype)


def matmul_bias(x, w, b):
    """x:[M,K] @ w:[K,N] + b:[N] -> [M,N] f32. Tiled MXU matmul (bf16 operands ok)."""
    M, K = x.shape
    K2, N = w.shape
    assert K == K2
    tm = _pick_tile(M, (512, 256, 128, 64, 32, 16, 8))
    tn = _pick_tile(N, (512, 384, 256, 128))
    tk = _pick_tile(K, (1024, 512, 256, 128))
    grid = (M // tm, N // tn, K // tk)
    return pl.pallas_call(
        _matmul_bias_kernel,
        out_shape=jax.ShapeDtypeStruct((M, N), jnp.float32),
        grid=grid,
        in_specs=[
            pl.BlockSpec((tm, tk), lambda i, j, k: (i, k)),
            pl.BlockSpec((tk, tn), lambda i, j, k: (k, j)),
            pl.BlockSpec((1, tn), lambda i, j, k: (0, j)),
        ],
        out_specs=pl.BlockSpec((tm, tn), lambda i, j, k: (i, j)),
        scratch_shapes=[pltpu.VMEM((tm, tn), jnp.float32)],
        compiler_params=pltpu.CompilerParams(
            dimension_semantics=("parallel", "parallel", "arbitrary")),
        cost_estimate=pl.CostEstimate(
            flops=2 * M * N * K,
            transcendentals=0,
            bytes_accessed=M * K * x.dtype.itemsize + K * N * w.dtype.itemsize + M * N * 4),
    )(x, w, b.reshape(1, N).astype(jnp.float32))


# --------------- fused bidirectional recurrence (+ fc epilogue) ---------------

def _bilstm_chunk_kernel(gxf_ref, gxb_ref, whhf_ref, whhb_ref, fcw_ref, fcb_ref,
                         out_ref, hf_scr, cf_scr, hb_scr, cb_scr,
                         *, hidden_dim, t_chunk, unroll):
    """Processes t_chunk timesteps of BOTH directions per grid step.

    gxf_ref: [t_chunk, B, 4H] forward-direction input gates (time ascending).
    gxb_ref: [t_chunk, B, 4H] backward-direction input gates for the mirrored chunk
             (the kernel walks it in descending local order).
    Gate column layout inside each 4H block is (i, f, o, g).
    """
    H = hidden_dim
    i = pl.program_id(0)

    @pl.when(i == 0)
    def _():
        hf_scr[...] = jnp.zeros_like(hf_scr)
        cf_scr[...] = jnp.zeros_like(cf_scr)
        hb_scr[...] = jnp.zeros_like(hb_scr)
        cb_scr[...] = jnp.zeros_like(cb_scr)

    whh_f = whhf_ref[...]   # [H, 4H] bf16, hoisted out of the time loop
    whh_b = whhb_ref[...]   # [H, 4H] bf16

    def step(k, carry):
        h_f, c_f, h_b, c_b = carry
        # Two independent small MXU dots per step (fwd & bwd) keep the MXU busy
        # while the other direction is in its EUP/VALU tail. bf16 ops, f32 acc.
        gf = gxf_ref[k] + jnp.dot(h_f.astype(jnp.bfloat16), whh_f,
                                  preferred_element_type=jnp.float32)
        gb = gxb_ref[t_chunk - 1 - k] + jnp.dot(h_b.astype(jnp.bfloat16), whh_b,
                                                preferred_element_type=jnp.float32)
        # Gate order (i, f, o, g): one sigmoid dispatch + one tanh dispatch per dir.
        sf = jax.nn.sigmoid(gf[:, :3 * H])
        g_f = jnp.tanh(gf[:, 3 * H:])
        sb = jax.nn.sigmoid(gb[:, :3 * H])
        g_b = jnp.tanh(gb[:, 3 * H:])
        c_f = sf[:, H:2 * H] * c_f + sf[:, :H] * g_f
        h_f = sf[:, 2 * H:3 * H] * jnp.tanh(c_f)
        c_b = sb[:, H:2 * H] * c_b + sb[:, :H] * g_b
        h_b = sb[:, 2 * H:3 * H] * jnp.tanh(c_b)
        return (h_f, c_f, h_b, c_b)

    carry = (hf_scr[...], cf_scr[...], hb_scr[...], cb_scr[...])
    h_f, c_f, h_b, c_b = jax.lax.fori_loop(0, t_chunk, step, carry, unroll=unroll)
    hf_scr[...] = h_f
    cf_scr[...] = c_f
    hb_scr[...] = h_b
    cb_scr[...] = c_b

    # Output written exactly once, on the last chunk: final hiddens -> fused fc.
    # Two dots against the row-split fc weight avoid a lane-concat of h_f|h_b.
    @pl.when(i == pl.num_programs(0) - 1)
    def _():
        out_ref[...] = (jnp.dot(h_f, fcw_ref[:H, :], preferred_element_type=jnp.float32)
                        + jnp.dot(h_b, fcw_ref[H:, :], preferred_element_type=jnp.float32)
                        + fcb_ref[...])


def bilstm_recurrence_fc(gx, whh_f_T, whh_b_T, fc_wT, fc_b, *, hidden_dim, t_chunk):
    """gx: [T, B, 8H] f32 (cols = [fwd i,f,o,g | bwd i,f,o,g]). Returns logits [B, O]."""
    T, Bp, G2 = gx.shape
    H = hidden_dim
    G = 4 * H
    assert G2 == 2 * G and T % t_chunk == 0
    # Half-width gx column blocks must be lane-aligned (last block dim % 128 == 0).
    assert G % 128 == 0, "hidden_dim must be a multiple of 32 for this kernel"
    O = fc_wT.shape[1]
    n_chunks = T // t_chunk
    unroll = t_chunk if t_chunk <= 32 else 8
    kernel = functools.partial(_bilstm_chunk_kernel,
                               hidden_dim=H, t_chunk=t_chunk, unroll=unroll)
    return pl.pallas_call(
        kernel,
        out_shape=jax.ShapeDtypeStruct((Bp, O), jnp.float32),
        grid=(n_chunks,),
        in_specs=[
            # forward gates: chunk i, column block 0 -> cols [0, 4H)
            pl.BlockSpec((t_chunk, Bp, G), lambda i: (i, 0, 0)),
            # backward gates: mirrored chunk, column block 1 -> cols [4H, 8H)
            pl.BlockSpec((t_chunk, Bp, G), lambda i: (n_chunks - 1 - i, 0, 1)),
            pl.BlockSpec((H, G), lambda i: (0, 0)),
            pl.BlockSpec((H, G), lambda i: (0, 0)),
            pl.BlockSpec((2 * H, O), lambda i: (0, 0)),
            pl.BlockSpec((1, O), lambda i: (0, 0)),
        ],
        out_specs=pl.BlockSpec((Bp, O), lambda i: (0, 0)),
        scratch_shapes=[pltpu.VMEM((Bp, H), jnp.float32) for _ in range(4)],
        compiler_params=pltpu.CompilerParams(
            # time axis is a true sequential carry -> keep it "arbitrary"
            dimension_semantics=("arbitrary",)),
    )(gx, gx, whh_f_T, whh_b_T, fc_wT, fc_b.reshape(1, O).astype(jnp.float32))


# -------------------------------- model glue ---------------------------------

def init_params(key, vocab_size, embedding_dim, hidden_dim, output_dim):
    ks = jax.random.split(key, 11)
    s = 1.0 / np.sqrt(hidden_dim)
    sf = 1.0 / np.sqrt(2 * hidden_dim)

    def u(k, shape, scale):
        return jax.random.uniform(k, shape, jnp.float32, -scale, scale)

    return dict(
        embedding=u(ks[0], (vocab_size, embedding_dim), 1.0),
        # forward direction
        w_ih_f=u(ks[1], (4 * hidden_dim, embedding_dim), s),
        w_hh_f=u(ks[2], (4 * hidden_dim, hidden_dim), s),
        b_ih_f=u(ks[3], (4 * hidden_dim,), s),
        b_hh_f=u(ks[4], (4 * hidden_dim,), s),
        # backward direction
        w_ih_b=u(ks[5], (4 * hidden_dim, embedding_dim), s),
        w_hh_b=u(ks[6], (4 * hidden_dim, hidden_dim), s),
        b_ih_b=u(ks[7], (4 * hidden_dim,), s),
        b_hh_b=u(ks[8], (4 * hidden_dim,), s),
        # fc
        fc_w=u(ks[9], (output_dim, 2 * hidden_dim), sf),
        fc_b=u(ks[10], (output_dim,), sf),
    )


def bilstm_forward(params, text):
    """text: [B, T] int32 token ids -> logits [B, output_dim]."""
    B, T = text.shape
    H = params["w_hh_f"].shape[1]
    E = params["embedding"].shape[1]

    # Pad batch to a multiple of 8 sublanes (free MXU/vreg utilization); sliced off at end.
    Bp = max(8, ((B + 7) // 8) * 8)
    if Bp != B:
        text = jnp.pad(text, ((0, Bp - B), (0, 0)))

    # Embedding lookup, gathered TIME-MAJOR (transpose the tiny token matrix, not gx).
    # TODO(synk): dropout is identity here (inference / eval() semantics).
    emb_tm = jnp.take(params["embedding"], text.T, axis=0)        # [T, Bp, E]
    x2 = emb_tm.reshape(T * Bp, E).astype(jnp.bfloat16)

    # Pre-permute gates to (i, f, o, g) so the kernel issues one sigmoid + one tanh
    # per direction per timestep.  Pure row permutation -> identical math.
    wih_f = _reorder_gate_rows(params["w_ih_f"], H)
    wih_b = _reorder_gate_rows(params["w_ih_b"], H)
    whh_fT = _reorder_gate_rows(params["w_hh_f"], H).T.astype(jnp.bfloat16)  # [H, 4H]
    whh_bT = _reorder_gate_rows(params["w_hh_b"], H).T.astype(jnp.bfloat16)  # [H, 4H]
    bias_f = _reorder_gate_rows(params["b_ih_f"] + params["b_hh_f"], H)
    bias_b = _reorder_gate_rows(params["b_ih_b"] + params["b_hh_b"], H)

    # Fused input projection for both directions: cols = [fwd i,f,o,g | bwd i,f,o,g].
    wx = jnp.concatenate([wih_f.T, wih_b.T], axis=1).astype(jnp.bfloat16)   # [E, 8H]
    bias = jnp.concatenate([bias_f, bias_b])                                # [8H]
    gx = matmul_bias(x2, wx, bias).reshape(T, Bp, 8 * H)                    # f32, time-major

    # Timesteps per grid step (amortizes per-grid-step overhead; keep the two gx
    # chunk buffers well under VMEM limits — sized for v7x's smaller 64 MiB too).
    t_chunk = _largest_divisor_leq(T, 32)

    logits = bilstm_recurrence_fc(
        gx, whh_fT, whh_bT,
        params["fc_w"].T.astype(jnp.float32),
        params["fc_b"],
        hidden_dim=H, t_chunk=t_chunk)
    return logits[:B]


# ----------------------------- pure-JAX reference -----------------------------

def bilstm_reference(params, text):
    """lax.scan reference mirroring the kernel's compute-dtype policy
    (bf16 matmul operands, f32 accumulation / elementwise / state / fc).
    Uses PyTorch's native (i, f, g, o) gate order on the unpermuted params."""
    B, T = text.shape
    H = params["w_hh_f"].shape[1]
    emb = _bf16_round(jnp.take(params["embedding"], text, axis=0))   # [B, T, E]
    gx_f = (jnp.einsum("bte,eg->btg", emb, _bf16_round(params["w_ih_f"].T))
            + params["b_ih_f"] + params["b_hh_f"])
    gx_b = (jnp.einsum("bte,eg->btg", emb, _bf16_round(params["w_ih_b"].T))
            + params["b_ih_b"] + params["b_hh_b"])

    def run(gx, whh_T, reverse):
        def step(carry, g_t):
            h, c = carry
            g = g_t + _bf16_round(h) @ whh_T
            i = jax.nn.sigmoid(g[:, :H])
            f = jax.nn.sigmoid(g[:, H:2 * H])
            gg = jnp.tanh(g[:, 2 * H:3 * H])
            o = jax.nn.sigmoid(g[:, 3 * H:])
            c = f * c + i * gg
            h = o * jnp.tanh(c)
            return (h, c), None

        xs = jnp.swapaxes(gx, 0, 1)                                  # [T, B, 4H]
        if reverse:
            xs = xs[::-1]
        (h, _), _ = jax.lax.scan(step, (jnp.zeros((B, H)), jnp.zeros((B, H))), xs)
        return h

    h_f = run(gx_f, _bf16_round(params["w_hh_f"].T), reverse=False)  # hidden[-2]
    h_b = run(gx_b, _bf16_round(params["w_hh_b"].T), reverse=True)   # hidden[-1]
    hidden = jnp.concatenate([h_f, h_b], axis=1)
    return hidden @ params["fc_w"].T + params["fc_b"]


# ------------------------------------ main ------------------------------------

if __name__ == "__main__":
    vocab_size = 50
    embedding_dim = 16
    hidden_dim = 32
    output_dim = 4
    B, T = 2, 8

    key = jax.random.PRNGKey(0)
    kp, kx = jax.random.split(key)
    params = init_params(kp, vocab_size, embedding_dim, hidden_dim, output_dim)
    text = jax.random.randint(kx, (B, T), 0, vocab_size, dtype=jnp.int32)

    out = jax.block_until_ready(bilstm_forward(params, text))
    ref = jax.block_until_ready(bilstm_reference(params, text))

    np.testing.assert_allclose(np.asarray(out), np.asarray(ref), rtol=1e-3, atol=1e-3)
    assert out.shape == (B, output_dim)

    print("KERNEL_OK")
</pallas_src>

<mosaic_0001>
module attributes {stable_mosaic.version = 11 : i64} {
  func.func @_matmul_bias_kernel(%arg0: i32, %arg1: i32, %arg2: i32, %arg3: memref<64x16xbf16, #tpu.memory_space<vmem>>, %arg4: memref<16x256xbf16, #tpu.memory_space<vmem>>, %arg5: memref<1x256xf32, #tpu.memory_space<vmem>>, %arg6: memref<64x256xf32, #tpu.memory_space<vmem>>, %arg7: memref<64x256xf32, #tpu.memory_space<vmem>>) attributes {dimension_semantics = [#tpu.dimension_semantics<parallel>, #tpu.dimension_semantics<parallel>, #tpu.dimension_semantics<arbitrary>], iteration_bounds = array<i64: 1, 1, 1>, scalar_prefetch = 0 : i64, scratch_operands = 1 : i64, tpu.core_type = #tpu.core_type<tc>, window_params = [{transform_indices = @transform_0, window_bounds = array<i64: 64, 16>}, {transform_indices = @transform_1, window_bounds = array<i64: 16, 256>}, {transform_indices = @transform_2, window_bounds = array<i64: 1, 256>}, {transform_indices = @transform_3, window_bounds = array<i64: 64, 256>}]} {
    %c0_i32 = arith.constant 0 : i32
    %0 = arith.cmpi eq, %arg2, %c0_i32 : i32
    %1 = arith.extui %0 : i1 to i32
    %c0_i32_0 = arith.constant 0 : i32
    %2 = arith.cmpi ne, %1, %c0_i32_0 : i32
    scf.if %2 {
      %cst_10 = arith.constant 0.000000e+00 : f32
      %12 = vector.broadcast %cst_10 : f32 to vector<64x256xf32>
      %c0_11 = arith.constant 0 : index
      %c0_12 = arith.constant 0 : index
      %13 = vector.load %arg7[%c0_11, %c0_12] : memref<64x256xf32, #tpu.memory_space<vmem>>, vector<64x256xf32>
      tpu.vector_store %arg7[%c0_11, %c0_12], %12 {strides = array<i32>} : memref<64x256xf32, #tpu.memory_space<vmem>>, vector<64x256xf32>,
    } else {
    }
    %c0 = arith.constant 0 : index
    %c0_1 = arith.constant 0 : index
    %3 = vector.load %arg7[%c0, %c0_1] : memref<64x256xf32, #tpu.memory_space<vmem>>, vector<64x256xf32>
    %c0_2 = arith.constant 0 : index
    %c0_3 = arith.constant 0 : index
    %4 = vector.load %arg3[%c0_2, %c0_3] : memref<64x16xbf16, #tpu.memory_space<vmem>>, vector<64x16xbf16>
    %c0_4 = arith.constant 0 : index
    %c0_5 = arith.constant 0 : index
    %5 = vector.load %arg4[%c0_4, %c0_5] : memref<16x256xbf16, #tpu.memory_space<vmem>>, vector<16x256xbf16>
    %cst = arith.constant dense<0.000000e+00> : vector<64x256xf32>
    %6 = tpu.matmul %4, %5, %cst {dimension_numbers = #tpu.dot_dimension_numbers<[1], [0], [0], [1], [0, 0, 1, 1], [], []>} : vector<64x16xbf16>, vector<16x256xbf16>, vector<64x256xf32> -> vector<64x256xf32>
    %7 = arith.addf %3, %6 : vector<64x256xf32>
    %c0_6 = arith.constant 0 : index
    %c0_7 = arith.constant 0 : index
    %8 = vector.load %arg7[%c0_6, %c0_7] : memref<64x256xf32, #tpu.memory_space<vmem>>, vector<64x256xf32>
    tpu.vector_store %arg7[%c0_6, %c0_7], %7 {strides = array<i32>} : memref<64x256xf32, #tpu.memory_space<vmem>>, vector<64x256xf32>,
    %c0_i32_8 = arith.constant 0 : i32
    %9 = arith.cmpi eq, %arg2, %c0_i32_8 : i32
    %10 = arith.extui %9 : i1 to i32
    %c0_i32_9 = arith.constant 0 : i32
    %11 = arith.cmpi ne, %10, %c0_i32_9 : i32
    scf.if %11 {
      %c0_10 = arith.constant 0 : index
      %c0_11 = arith.constant 0 : index
      %12 = vector.load %arg7[%c0_10, %c0_11] : memref<64x256xf32, #tpu.memory_space<vmem>>, vector<64x256xf32>
      %c0_12 = arith.constant 0 : index
      %c0_13 = arith.constant 0 : index
      %13 = vector.load %arg5[%c0_12, %c0_13] : memref<1x256xf32, #tpu.memory_space<vmem>>, vector<1x256xf32>
      %14 = vector.broadcast %13 : vector<1x256xf32> to vector<64x256xf32>
      %15 = arith.addf %12, %14 : vector<64x256xf32>
      %c0_14 = arith.constant 0 : index
      %c0_15 = arith.constant 0 : index
      %16 = vector.load %arg6[%c0_14, %c0_15] : memref<64x256xf32, #tpu.memory_space<vmem>>, vector<64x256xf32>
      tpu.vector_store %arg6[%c0_14, %c0_15], %15 {strides = array<i32>} : memref<64x256xf32, #tpu.memory_space<vmem>>, vector<64x256xf32>,
    } else {
    }
    return
  }
  func.func @transform_0(%arg0: i32, %arg1: i32, %arg2: i32) -> (i32, i32) {
    %c0_i32 = arith.constant 0 : i32
    return %arg0, %arg2 : i32, i32
  }
  func.func @transform_1(%arg0: i32, %arg1: i32, %arg2: i32) -> (i32, i32) {
    %c0_i32 = arith.constant 0 : i32
    return %arg2, %arg1 : i32, i32
  }
  func.func @transform_2(%arg0: i32, %arg1: i32, %arg2: i32) -> (i32, i32) {
    %c0_i32 = arith.constant 0 : i32
    %c0_i32_0 = arith.constant 0 : i32
    return %c0_i32, %arg1 : i32, i32
  }
  func.func @transform_3(%arg0: i32, %arg1: i32, %arg2: i32) -> (i32, i32) {
    %c0_i32 = arith.constant 0 : i32
    return %arg0, %arg1 : i32, i32
  }
}

</mosaic_0001>

<bundles_post_ra>
// kernel: tpu_custom_call.1
= control target key start
LH: loop header
LB: loop body
LE: loop exit
PB: predicated region body
PF: predicated region fallthrough
CT: control target
= control target key end

     0   :  { %v336_v2 = vmov 0   ;;  %vm92_vm0 = vcmask 130048   ;;  %s393_s0 = inlined_call_operand.vmem [shape: bf16[64,16], index: 0, kind: input, shape index: {}]   ;;  %s394_s1 = inlined_call_operand.vmem [shape: bf16[16,256], index: 1, kind: input, shape index: {}]   ;;  %s395_s2 = inlined_call_operand.vmem [shape: f32[1,256], index: 2, kind: input, shape index: {}]   ;;  %s396_s3 = inlined_call_operand.hbm [shape: f32[64,256], index: 3, kind: output, shape index: {}]  }
   0x1   :  { %v305_v0 = vld [vmem:[%s394_s1 + $0x4] ss:$8 sps:$4 sm:$0xff]   ;;  %v307_v1 = vld [vmem:[%s394_s1] ss:$8 sps:$4 sm:$0xff]   ;;  %137 = vmatprep.mubr.bf16.mxu0 %v336_v2  ;;  %157 = vmatprep.mubr.bf16.mxu1 %v336_v2  ;;  %v309_v4 = vld [vmem:[%s393_s0 + $0x10] sm:$0xff]  }
   0x2   :  { %105 = vmatprep.subr.bf16.mxu0 %v305_v0  ;;  %299 = vmatprep.subr.bf16.mxu1 %v305_v0  ;;  %v308_v3 = vld [vmem:[%s393_s0] sm:$0xff]  }
   0x3   :  { %106 = vmatpush1.bf16.msra.mxu0 %v307_v1  ;;  %300 = vmatpush1.bf16.msra.mxu1 %v307_v1 }
   0x4   :  { %8 = vsyncpa [#allocation4], 0  ;;  %v310_v5 = vld [vmem:[%s393_s0 + $0x8] sm:$0xff]   ;;  %v311_v6 = vld [vmem:[%s393_s0 + $0x18] sm:$0xff]   ;;  %v231_v7 = vlaneseq  ;;  %s337_s0 = smov [#allocation3]  }
   0x5   :  { %v229_v10 = vld [vmem:[%s395_s2] sm:$0x3]  ;;  %s278_s2 = sshll.u32 %s337_s0, 4  ;;  %s279_s2 = int_to_ptr.vmem [resolvable:$true] %s278_s2 }
   0x6   :  { %295 = vmatmul.mubr.msk.bf16.vlgmr.msra.gmra.mrb[0].mxu0 %vm92_vm0, %v308_v3  ;;  %297 = vmatmul.mubr.msk.bf16.vlgmr.msra.gmra.mrb[0].mxu1 %vm92_vm0, %v309_v4  ;;  %v232_v8 = vshrl.u32 %v231_v7, 7  ;;  %s312_s25 = scalar_lea.vmem %s279_s2, 2048  ;;  %p317_p1 = scmp.lt.s32.totalorder %s279_s2, %s279_s2 }
   0x7   :  { %147 = vmatprep.mubr.bf16.mxu0 %v336_v2  ;;  %167 = vmatprep.mubr.bf16.mxu1 %v336_v2  ;;  %p313_p0 = scmp.ne.s32.totalorder %s279_s2, %s312_s25  ;;  %p318_p2 = scmp.lt.s32.totalorder %s312_s25, %s312_s25 }
   0x8   :  { %v233_v9 = vsub.s32 0, %v232_v8  ;;  %v237_v11 = vsub.s32 1, %v232_v8 }
   0x9   :  { %p319_p3 = por %p318_p2, %p317_p1 }
   0xa   :  { %v234_v12 = vrot.slane %v229_v10, %v233_v9  ;;  %v238_v13 = vrot.slane %v229_v10, %v237_v11 }
   0xb   :  { %p320_p4 = pnand %p319_p3, %p313_p0 }
   0xe   :  { %296 = vmatmul.mubr.msk.bf16.gmra.mrb[4].mxu0 %vm92_vm0, %v310_v5  ;;  %298 = vmatmul.mubr.msk.bf16.gmra.mrb[4].mxu1 %vm92_vm0, %v311_v6 }
  0xd9   :  { %v139_v14 = vpop.f32.mrb[0].mxu0  ;;  %v159_v15 = vpop.f32.mrb[0].mxu1 }
  0xda   :  { %v241_v16 = vadd.f32 %v234_v12, %v139_v14  ;;  %v249_v17 = vadd.f32 %v234_v12, %v159_v15  ;;  %v141_v18 = vpop.f32.mrb[1].mxu0  ;;  %v161_v19 = vpop.f32.mrb[1].mxu1 }
  0xdb   :  { %v242_v20 = vadd.f32 %v238_v13, %v141_v18  ;;  %v250_v21 = vadd.f32 %v238_v13, %v161_v19  ;;  %v143_v22 = vpop.f32.mrb[2].mxu0  ;;  %v163_v23 = vpop.f32.mrb[2].mxu1 }
  0xdc   :  { %257 = vst [vmem:[#allocation3] sm:$0xff] %v241_v16  ;;  %265 = vst [vmem:[#allocation3 + $0x40] sm:$0xff] %v249_v17  ;;  %v243_v24 = vadd.f32 %v234_v12, %v143_v22  ;;  %v251_v25 = vadd.f32 %v234_v12, %v163_v23  ;;  %v145_v26 = vpop.f32.mrb[3].mxu0  ;;  %v165_v27 = vpop.f32.mrb[3].mxu1 }
  0xdd   :  { %258 = vst [vmem:[#allocation3 + $0x8] sm:$0xff] %v242_v20  ;;  %266 = vst [vmem:[#allocation3 + $0x48] sm:$0xff] %v250_v21  ;;  %v244_v28 = vadd.f32 %v238_v13, %v145_v26  ;;  %v252_v29 = vadd.f32 %v238_v13, %v165_v27 }
  0xde   :  { %259 = vst [vmem:[#allocation3 + $0x10] sm:$0xff] %v243_v24  ;;  %267 = vst [vmem:[#allocation3 + $0x50] sm:$0xff] %v251_v25 }
  0xdf   :  { %260 = vst [vmem:[#allocation3 + $0x18] sm:$0xff] %v244_v28  ;;  %268 = vst [vmem:[#allocation3 + $0x58] sm:$0xff] %v252_v29 }
  0xe1   :  { %v149_v30 = vpop.f32.mrb[4].mxu0  ;;  %v169_v31 = vpop.f32.mrb[4].mxu1 }
  0xe2   :  { %v245_v32 = vadd.f32 %v234_v12, %v149_v30  ;;  %v253_v33 = vadd.f32 %v234_v12, %v169_v31  ;;  %v151_v34 = vpop.f32.mrb[5].mxu0  ;;  %v171_v35 = vpop.f32.mrb[5].mxu1 }
  0xe3   :  { %v246_v36 = vadd.f32 %v238_v13, %v151_v34  ;;  %v254_v37 = vadd.f32 %v238_v13, %v171_v35  ;;  %v153_v38 = vpop.f32.mrb[6].mxu0  ;;  %v173_v39 = vpop.f32.mrb[6].mxu1 }
  0xe4   :  { %261 = vst [vmem:[#allocation3 + $0x20] sm:$0xff] %v245_v32  ;;  %269 = vst [vmem:[#allocation3 + $0x60] sm:$0xff] %v253_v33  ;;  %v247_v40 = vadd.f32 %v234_v12, %v153_v38  ;;  %v255_v41 = vadd.f32 %v234_v12, %v173_v39  ;;  %v155_v42 = vpop.f32.mrb[7].mxu0  ;;  %v175_v43 = vpop.f32.mrb[7].mxu1 }
  0xe5   :  { %262 = vst [vmem:[#allocation3 + $0x28] sm:$0xff] %v246_v36  ;;  %270 = vst [vmem:[#allocation3 + $0x68] sm:$0xff] %v254_v37  ;;  %v248_v44 = vadd.f32 %v238_v13, %v155_v42  ;;  %v256_v45 = vadd.f32 %v238_v13, %v175_v43 }
  0xe6   :  { %263 = vst [vmem:[#allocation3 + $0x30] sm:$0xff] %v247_v40  ;;  %271 = vst [vmem:[#allocation3 + $0x70] sm:$0xff] %v255_v41 }
  0xe7   :  { %264 = vst [vmem:[#allocation3 + $0x38] sm:$0xff] %v248_v44  ;;  %272 = vst [vmem:[#allocation3 + $0x78] sm:$0xff] %v256_v45 }
  0xe8   :  { %323 = shalt.err (!%p320_p4)
}
  0xe9   :  { %s324_s28 = scalar_lea.hbm %s396_s3, 2048 }
  0xea   :  { %p325_p5 = scmp.ne.s32.totalorder %s396_s3, %s324_s28  ;;  %p328_p6 = scmp.lt.u32.totalorder %s324_s28, %s396_s3 }
  0xec   :  { %p330_p7 = pnand %p328_p6, %p325_p5 }
  0xee   :  { %333 = shalt.err (!%p330_p7)
}
  0xef   :  { %s338_s6 = smov 256   ;;  %s339_s7 = smov 16  }
  0xf0   :  { %284 = dma.vmem_to_hbm [thread:$0]  %s279_s2, 2048, %s396_s3, [#allocation4], %s338_s6, %s338_s6, %s339_s7  }
  0xf1   :  { %334 = dma.done.wait [#allocation4], 2048  }
  0xf2   :  { %335 = vsyncadd [#allocation4], 4294965248 }
  0xf3   :  { %288 = vsyncpa [#allocation4], 1 }

</bundles_post_ra>
